<compile_context>
chip_gen: v7x
topology: tpu7x:2x2x1
jax: 0.10.0
libtpu: 0.0.40
codegen_flags: <defaults>
</compile_context>

<pallas_src>
import functools
import math

import jax
import jax.numpy as jnp
from jax.experimental import pallas as pl
from jax.experimental.pallas import tpu as pltpu


def _channel_attention_kernel(x_ref, w1t_ref, w2t_ref, o_ref, acc_ref, *,
                              hw_total, hw_blk, lane_chunks):
    # x_ref   : (1, C, hw_blk)    VMEM tile of the flattened NCHW input
    # w1t_ref : (C, hidden)       first Linear weight, pre-transposed (in, out)
    # w2t_ref : (hidden, C)       second Linear weight, pre-transposed
    # o_ref   : (1, 1, C)         attention weights for this batch element
    # acc_ref : (1, C, 128) f32   lane-preserving spatial-sum accumulator
    k = pl.program_id(1)
    last_k = pl.num_programs(1) - 1

    # ---- init: zero the accumulator on the first HW tile of this batch ----
    @pl.when(k == 0)
    def _():
        acc_ref[...] = jnp.zeros_like(acc_ref)

    # ---- per-tile accumulate (lane-preserving VPU adds) --------------------
    def accumulate(masked):
        if lane_chunks is None:
            # hw_blk == HW and not a multiple of 128: single full-extent tile.
            x = x_ref[...].astype(jnp.float32)                    # (1, C, HW)
            acc_ref[:, :, 0:1] += jnp.sum(x, axis=-1, keepdims=True)
            return

        base = k * hw_blk

        def add_chunk(i, carry):
            off = pl.multiple_of(i * 128, 128)
            chunk = x_ref[:, :, pl.ds(off, 128)].astype(jnp.float32)
            if masked:
                lane = (jax.lax.broadcasted_iota(jnp.int32, (1, 1, 128), 2)
                        + base + off)
                chunk = jnp.where(lane < hw_total, chunk, 0.0)
            return carry + chunk

        part = jax.lax.fori_loop(
            0, lane_chunks, add_chunk,
            jnp.zeros(acc_ref.shape, jnp.float32),
            unroll=min(lane_chunks, 8))
        acc_ref[...] += part

    if hw_total % hw_blk == 0 or lane_chunks is None:
        accumulate(masked=False)                 # no padded tail anywhere
    else:
        @pl.when(k < last_k)
        def _():
            accumulate(masked=False)             # interior tiles: no masking

        @pl.when(k == last_k)
        def _():
            accumulate(masked=True)              # only the partial last tile

    # ---- finalize: lane reduce + FC -> ReLU -> FC -> sigmoid, once per b --
    @pl.when(k == last_k)
    def _():
        y = jnp.sum(acc_ref[...], axis=-1) * jnp.float32(1.0 / hw_total)  # (1, C)
        h = jnp.dot(y, w1t_ref[...].astype(jnp.float32),
                    preferred_element_type=jnp.float32)                   # (1, hidden)
        h = jnp.maximum(h, 0.0)
        z = jnp.dot(h, w2t_ref[...].astype(jnp.float32),
                    preferred_element_type=jnp.float32)                   # (1, C)
        o_ref[...] = jax.nn.sigmoid(z).reshape(o_ref.shape).astype(o_ref.dtype)


def _device_kind():
    try:
        return jax.devices()[0].device_kind.lower()
    except Exception:
        return ""


def channel_attention(x, w1, w2, *, hw_block_lanes=None):
    """x: (B, C, H, W).  w1: (C//r, C), w2: (C, C//r) in PyTorch Linear layout
    (out_features, in_features), bias-free.  Returns attention weights of
    shape (B, C, 1, 1), matching ChannelAttention.forward."""
    B, C, H, W = x.shape
    HW = H * W
    hidden = w1.shape[0]
    assert w1.shape == (hidden, C) and w2.shape == (C, hidden)

    itemsize = jnp.dtype(x.dtype).itemsize
    kind = _device_kind()
    is_v7 = ("v7" in kind) or ("7x" in kind)
    is_v5 = "v5" in kind

    # ---- generation-aware block sizing (bytes, not lanes) ------------------
    if hw_block_lanes is not None:
        lanes = max(128, (int(hw_block_lanes) // 128) * 128)
    else:
        if is_v7:
            target_bytes = 6 << 20    # 4-8 MiB: amortize step overhead at 3.2 TB/s
        elif is_v5:
            target_bytes = 1 << 20    # ~1 MiB already ~85% of 0.82 TB/s roofline
        else:
            target_bytes = 2 << 20    # v6e / unknown
        lanes = max(128, (target_bytes // (C * itemsize)) // 128 * 128)
    hw_blk = HW if HW <= lanes else int(lanes)
    num_k = pl.cdiv(HW, hw_blk)
    lane_chunks = hw_blk // 128 if hw_blk % 128 == 0 else None
    if lane_chunks is None:
        assert num_k == 1   # only the single full-extent-tile case

    x3 = x.reshape(B, C, HW)   # free for contiguous NCHW; no transpose/upcast
    w1t = w1.T                 # (C, hidden)
    w2t = w2.T                 # (hidden, C)

    # ---- VMEM budget: x buffers + resident weights + scratch + headroom ----
    x_buffers = 3 if (is_v7 and num_k >= 2) else 2
    x_block_bytes = C * hw_blk * itemsize
    w_bytes = 2 * 2 * C * hidden * jnp.dtype(w1.dtype).itemsize
    scratch_bytes = C * 128 * 4
    out_bytes = 2 * C * itemsize
    vmem_limit = int(x_buffers * x_block_bytes + w_bytes + scratch_bytes
                     + out_bytes + (8 << 20))
    vmem_limit = max(16 << 20, min(vmem_limit, 56 << 20))

    # ---- megacore: shard the batch axis across TensorCores on v7x ----------
    if is_v7 and B >= 2:
        dims = (pltpu.CORE_PARALLEL, pltpu.ARBITRARY)
    else:
        # TODO(synk): for B == 1 on v7x, split the HW reduction across the two
        # TensorCores with a partial-sum combine instead of leaving one idle.
        dims = ("parallel", "arbitrary")

    if x_buffers > 2:
        x_spec = pl.BlockSpec((1, C, hw_blk), lambda b, k: (b, 0, k),
                              pipeline_mode=pl.Buffered(x_buffers))
    else:
        x_spec = pl.BlockSpec((1, C, hw_blk), lambda b, k: (b, 0, k))

    kernel = functools.partial(_channel_attention_kernel, hw_total=HW,
                               hw_blk=hw_blk, lane_chunks=lane_chunks)

    cost = pl.CostEstimate(
        flops=B * C * HW + 4 * B * C * hidden,
        transcendentals=B * C,
        bytes_accessed=B * C * HW * itemsize
        + 2 * C * hidden * 4
        + B * C * itemsize,
    )

    grid_spec = pltpu.PrefetchScalarGridSpec(
        num_scalar_prefetch=0,
        grid=(B, num_k),
        in_specs=[
            x_spec,
            pl.BlockSpec((C, hidden), lambda b, k: (0, 0)),   # resident weight
            pl.BlockSpec((hidden, C), lambda b, k: (0, 0)),   # resident weight
        ],
        out_specs=pl.BlockSpec((1, 1, C), lambda b, k: (b, 0, 0)),
        scratch_shapes=[pltpu.VMEM((1, C, 128), jnp.float32)],
    )

    out = pl.pallas_call(
        kernel,
        out_shape=jax.ShapeDtypeStruct((B, 1, C), x.dtype),
        grid_spec=grid_spec,
        compiler_params=pltpu.CompilerParams(
            dimension_semantics=dims,
            vmem_limit_bytes=vmem_limit),
        cost_estimate=cost,
    )(x3, w1t, w2t)

    return out.reshape(B, C, 1, 1)


def _reference(x, w1, w2):
    y = jnp.mean(x, axis=(2, 3))                  # AdaptiveAvgPool2d(1)
    y = jnp.maximum(y @ w1.T, 0.0)                # Linear + ReLU
    y = jax.nn.sigmoid(y @ w2.T)                  # Linear + Sigmoid
    return y.reshape(x.shape[0], x.shape[1], 1, 1)


def _make_weights(key, C, reduction):
    hidden = C // reduction
    k1, k2 = jax.random.split(key)
    b1 = 1.0 / math.sqrt(C)
    b2 = 1.0 / math.sqrt(hidden)
    w1 = jax.random.uniform(k1, (hidden, C), jnp.float32, -b1, b1)
    w2 = jax.random.uniform(k2, (C, hidden), jnp.float32, -b2, b2)
    return w1, w2


if __name__ == "__main__":
    key = jax.random.PRNGKey(0)
    reduction = 16

    # --- Test 1: HW multiple of 128, single tile, lane-preserving accum ----
    B, C, H, W = 2, 64, 16, 16
    kx, kw, key = jax.random.split(key, 3)
    x = jax.random.normal(kx, (B, C, H, W), dtype=jnp.float32)
    w1, w2 = _make_weights(kw, C, reduction)
    y = channel_attention(x, w1, w2)
    jax.block_until_ready(y)
    assert y.shape == (B, C, 1, 1)
    assert jnp.allclose(y, _reference(x, w1, w2), atol=1e-5, rtol=1e-5)

    # --- Test 2: multi-tile HW reduction with gated masked partial tail ----
    B2, C2, H2, W2 = 2, 32, 20, 20          # HW = 400, 128-lane tiles -> 4 tiles
    kx, kw, key = jax.random.split(key, 3)
    x2 = jax.random.normal(kx, (B2, C2, H2, W2), dtype=jnp.float32)
    w1b, w2b = _make_weights(kw, C2, reduction)
    y2 = channel_attention(x2, w1b, w2b, hw_block_lanes=128)
    jax.block_until_ready(y2)
    assert y2.shape == (B2, C2, 1, 1)
    assert jnp.allclose(y2, _reference(x2, w1b, w2b), atol=1e-5, rtol=1e-5)

    # --- Test 3: HW < 128 (full-extent block, non-128 lane width) ----------
    B3, C3, H3, W3 = 2, 32, 10, 10          # HW = 100, single full-extent tile
    kx, kw, key = jax.random.split(key, 3)
    x3 = jax.random.normal(kx, (B3, C3, H3, W3), dtype=jnp.float32)
    w1c, w2c = _make_weights(kw, C3, reduction)
    y3 = channel_attention(x3, w1c, w2c)
    jax.block_until_ready(y3)
    assert y3.shape == (B3, C3, 1, 1)
    assert jnp.allclose(y3, _reference(x3, w1c, w2c), atol=1e-5, rtol=1e-5)

    print("KERNEL_OK")
</pallas_src>

<mosaic_0001>
module attributes {stable_mosaic.version = 11 : i64} {
  func.func @_channel_attention_kernel(%arg0: i32, %arg1: i32, %arg2: memref<1x64x256xf32, #tpu.memory_space<vmem>>, %arg3: memref<64x4xf32, #tpu.memory_space<vmem>>, %arg4: memref<4x64xf32, #tpu.memory_space<vmem>>, %arg5: memref<1x1x64xf32, #tpu.memory_space<vmem>>, %arg6: memref<1x64x128xf32, #tpu.memory_space<vmem>>) attributes {dimension_semantics = [#tpu.dimension_semantics<parallel>, #tpu.dimension_semantics<arbitrary>], iteration_bounds = array<i64: 2, 1>, scalar_prefetch = 0 : i64, scratch_operands = 1 : i64, tpu.core_type = #tpu.core_type<tc>, window_params = [{transform_indices = @transform_0, window_bounds = array<i64: 1, 64, 256>}, {pipeline_mode = #tpu.pipeline_mode<synchronous>, transform_indices = @transform_1, window_bounds = array<i64: 64, 4>}, {pipeline_mode = #tpu.pipeline_mode<synchronous>, transform_indices = @transform_2, window_bounds = array<i64: 4, 64>}, {transform_indices = @transform_3, window_bounds = array<i64: 1, 1, 64>}]} {
    %c0_i32 = arith.constant 0 : i32
    %0 = arith.cmpi eq, %arg1, %c0_i32 : i32
    %1 = arith.extui %0 : i1 to i32
    %c0_i32_0 = arith.constant 0 : i32
    %2 = arith.cmpi ne, %1, %c0_i32_0 : i32
    scf.if %2 {
      %cst_14 = arith.constant 0.000000e+00 : f32
      %20 = vector.broadcast %cst_14 : f32 to vector<1x64x128xf32>
      %c0_15 = arith.constant 0 : index
      %c0_16 = arith.constant 0 : index
      %c0_17 = arith.constant 0 : index
      %21 = vector.load %arg6[%c0_15, %c0_16, %c0_17] : memref<1x64x128xf32, #tpu.memory_space<vmem>>, vector<1x64x128xf32>
      tpu.vector_store %arg6[%c0_15, %c0_16, %c0_17], %20 {strides = array<i32>} : memref<1x64x128xf32, #tpu.memory_space<vmem>>, vector<1x64x128xf32>,
    } else {
    }
    %cst = arith.constant 0.000000e+00 : f32
    %3 = vector.broadcast %cst : f32 to vector<1x64x128xf32>
    %c0_i32_1 = arith.constant 0 : i32
    %c128_i32 = arith.constant 128 : i32
    %4 = arith.muli %c0_i32_1, %c128_i32 : i32
    %5 = tpu.assume_multiple %4, 128 : i32
    %c0 = arith.constant 0 : index
    %c0_2 = arith.constant 0 : index
    %6 = arith.index_cast %5 : i32 to index
    %7 = vector.load %arg2[%c0, %c0_2, %6] : memref<1x64x256xf32, #tpu.memory_space<vmem>>, vector<1x64x128xf32>
    %8 = arith.addf %3, %7 : vector<1x64x128xf32>
    %c1_i32 = arith.constant 1 : i32
    %c128_i32_3 = arith.constant 128 : i32
    %9 = arith.muli %c1_i32, %c128_i32_3 : i32
    %10 = tpu.assume_multiple %9, 128 : i32
    %c0_4 = arith.constant 0 : index
    %c0_5 = arith.constant 0 : index
    %11 = arith.index_cast %10 : i32 to index
    %12 = vector.load %arg2[%c0_4, %c0_5, %11] : memref<1x64x256xf32, #tpu.memory_space<vmem>>, vector<1x64x128xf32>
    %13 = arith.addf %8, %12 : vector<1x64x128xf32>
    %c2_i32 = arith.constant 2 : i32
    %c0_6 = arith.constant 0 : index
    %c0_7 = arith.constant 0 : index
    %c0_8 = arith.constant 0 : index
    %14 = vector.load %arg6[%c0_6, %c0_7, %c0_8] : memref<1x64x128xf32, #tpu.memory_space<vmem>>, vector<1x64x128xf32>
    %15 = arith.addf %14, %13 : vector<1x64x128xf32>
    %c0_9 = arith.constant 0 : index
    %c0_10 = arith.constant 0 : index
    %c0_11 = arith.constant 0 : index
    %16 = vector.load %arg6[%c0_9, %c0_10, %c0_11] : memref<1x64x128xf32, #tpu.memory_space<vmem>>, vector<1x64x128xf32>
    tpu.vector_store %arg6[%c0_9, %c0_10, %c0_11], %15 {strides = array<i32>} : memref<1x64x128xf32, #tpu.memory_space<vmem>>, vector<1x64x128xf32>,
    %c0_i32_12 = arith.constant 0 : i32
    %17 = arith.cmpi eq, %arg1, %c0_i32_12 : i32
    %18 = arith.extui %17 : i1 to i32
    %c0_i32_13 = arith.constant 0 : i32
    %19 = arith.cmpi ne, %18, %c0_i32_13 : i32
    scf.if %19 {
      %c0_14 = arith.constant 0 : index
      %c0_15 = arith.constant 0 : index
      %c0_16 = arith.constant 0 : index
      %20 = vector.load %arg6[%c0_14, %c0_15, %c0_16] : memref<1x64x128xf32, #tpu.memory_space<vmem>>, vector<1x64x128xf32>
      %cst_17 = arith.constant dense<0.000000e+00> : vector<1x64xf32>
      %21 = vector.multi_reduction <add>, %20, %cst_17 [2] : vector<1x64x128xf32> to vector<1x64xf32>
      %cst_18 = arith.constant 3.906250e-03 : f32
      %22 = vector.broadcast %cst_18 : f32 to vector<1x64xf32>
      %23 = arith.mulf %21, %22 : vector<1x64xf32>
      %c0_19 = arith.constant 0 : index
      %c0_20 = arith.constant 0 : index
      %24 = vector.load %arg3[%c0_19, %c0_20] : memref<64x4xf32, #tpu.memory_space<vmem>>, vector<64x4xf32>
      %cst_21 = arith.constant dense<0.000000e+00> : vector<1x4xf32>
      %25 = tpu.matmul %23, %24, %cst_21 {dimension_numbers = #tpu.dot_dimension_numbers<[1], [0], [0], [1], [0, 0, 1, 1], [], []>} : vector<1x64xf32>, vector<64x4xf32>, vector<1x4xf32> -> vector<1x4xf32>
      %cst_22 = arith.constant 0.000000e+00 : f32
      %26 = vector.broadcast %cst_22 : f32 to vector<1x4xf32>
      %27 = arith.maximumf %25, %26 : vector<1x4xf32>
      %c0_23 = arith.constant 0 : index
      %c0_24 = arith.constant 0 : index
      %28 = vector.load %arg4[%c0_23, %c0_24] : memref<4x64xf32, #tpu.memory_space<vmem>>, vector<4x64xf32>
      %cst_25 = arith.constant dense<0.000000e+00> : vector<1x64xf32>
      %29 = tpu.matmul %27, %28, %cst_25 {dimension_numbers = #tpu.dot_dimension_numbers<[1], [0], [0], [1], [0, 0, 1, 1], [], []>} : vector<1x4xf32>, vector<4x64xf32>, vector<1x64xf32> -> vector<1x64xf32>
      %30 = arith.negf %29 : vector<1x64xf32>
      %31 = math.exp %30 : vector<1x64xf32>
      %cst_26 = arith.constant 1.000000e+00 : f32
      %32 = vector.broadcast %cst_26 : f32 to vector<1x64xf32>
      %33 = arith.addf %32, %31 : vector<1x64xf32>
      %34 = arith.divf %32, %33 : vector<1x64xf32>
      %35 = vector.shape_cast %34 : vector<1x64xf32> to vector<1x1x64xf32>
      %c0_27 = arith.constant 0 : index
      %c0_28 = arith.constant 0 : index
      %c0_29 = arith.constant 0 : index
      %36 = vector.load %arg5[%c0_27, %c0_28, %c0_29] : memref<1x1x64xf32, #tpu.memory_space<vmem>>, vector<1x1x64xf32>
      tpu.vector_store %arg5[%c0_27, %c0_28, %c0_29], %35 {strides = array<i32>} : memref<1x1x64xf32, #tpu.memory_space<vmem>>, vector<1x1x64xf32>,
    } else {
    }
    return
  }
  func.func @transform_0(%arg0: i32, %arg1: i32) -> (i32, i32, i32) {
    %c0_i32 = arith.constant 0 : i32
    %c0_i32_0 = arith.constant 0 : i32
    return %arg0, %c0_i32, %arg1 : i32, i32, i32
  }
  func.func @transform_1(%arg0: i32, %arg1: i32) -> (i32, i32) {
    %c0_i32 = arith.constant 0 : i32
    %c0_i32_0 = arith.constant 0 : i32
    %c0_i32_1 = arith.constant 0 : i32
    return %c0_i32, %c0_i32_0 : i32, i32
  }
  func.func @transform_2(%arg0: i32, %arg1: i32) -> (i32, i32) {
    %c0_i32 = arith.constant 0 : i32
    %c0_i32_0 = arith.constant 0 : i32
    %c0_i32_1 = arith.constant 0 : i32
    return %c0_i32, %c0_i32_0 : i32, i32
  }
  func.func @transform_3(%arg0: i32, %arg1: i32) -> (i32, i32, i32) {
    %c0_i32 = arith.constant 0 : i32
    %c0_i32_0 = arith.constant 0 : i32
    %c0_i32_1 = arith.constant 0 : i32
    return %arg0, %c0_i32, %c0_i32_0 : i32, i32, i32
  }
}

</mosaic_0001>

<bundles_post_ra>
// kernel: tpu_custom_call.1
= control target key start
LH: loop header
LB: loop body
LE: loop exit
PB: predicated region body
PF: predicated region fallthrough
CT: control target
= control target key end

     0   :  { %8 = vsyncpa [#allocation4], 0  ;;  %s1117_s0 = inlined_call_operand.hbm [shape: f32[2,64,256], index: 0, kind: input, shape index: {}]   ;;  %s1118_s1 = inlined_call_operand.vmem [shape: f32[64,4], index: 1, kind: input, shape index: {}]   ;;  %s1119_s2 = inlined_call_operand.vmem [shape: f32[4,64], index: 2, kind: input, shape index: {}]   ;;  %s1120_s3 = inlined_call_operand.hbm [shape: f32[2,1,64], index: 3, kind: output, shape index: {}]  }
   0x1   :  { %10 = vsyncpa [#allocation4 + $0x1], 0 }
   0x2   :  { %11 = vsyncpa [#allocation5], 0 }
   0x3   :  { %13 = vsyncpa [#allocation5 + $0x1], 0  ;;  %s915_s12 = smov 0   ;;  %s917_s13 = smov 0  }
   0x4   :  { %s919_s14 = smov 0   ;;  %s921_s15 = smov 0  }
   0x5   :  { %s923_s16 = smov 0   ;;  %s925_s17 = smov 0  }
   0x6 LB: > { %s631_s18 = sadd.s32 4294967295, %s886_s17   ;;  %s632_s19 = sadd.s32 4294967294, %s886_s17   ;;  %s886_s17 = sphi %s925_s17, %s19_s17   ;;  %s882_s16 = sphi %s923_s16, %s1135_s16   ;;  %s878_s15 = sphi %s921_s15, %s1134_s15   ;;  %s874_s14 = sphi %s919_s14, %s1133_s14   ;;  %s870_s13 = sphi %s917_s13, %s1132_s13   ;;  %s866_s12 = sphi %s915_s12, %s1131_s12  }
   0x7   : > { %s31_s20 = sadd.s32 1, %s882_s16  ;;  %s40_s21 = sadd.s32 1, %s874_s14 }
   0x8   : > { %p33_p0 = scmp.ge.s32.totalorder %s31_s20, 2  ;;  %p47_p1 = scmp.ne.s32.totalorder %s874_s14, %s870_s13 }
   0x9   : > { %p48_p2 = scmp.eq.s32.totalorder %s886_s17, 0  ;;  %p53_p3 = scmp.ne.s32.totalorder %s870_s13, %s866_s12 }
   0xa   : > { %s1137_s20 = smov (%p33_p0, %s31_s20), 0  ;;  %p54_p5 = scmp.eq.s32.totalorder %s631_s18, 0 }
   0xb   : > { %p956_p4 = por %p48_p2, %p47_p1  ;;  %s35_s23 = ssub.s32 %s882_s16, %s1137_s20 }
   0xc   : > { %p119_p6 = scmp.eq.s32.totalorder %s631_s18, 1  ;;  %p38_p7 = scmp.eq.s32.totalorder %s35_s23, 0 }
   0xd   : > { %p962_p8 = por %p54_p5, %p53_p3  ;;  %p125_p10 = scmp.eq.s32.totalorder %s632_s19, 1 }
   0xe   : > { %p966_p9 = por %p119_p6, %p47_p1  ;;  %p715_p13 = scmp.lt.s32.totalorder %s886_s17, 2 }
   0xf   : > { %s971_s26 = scalar_select %p38_p7, %s874_s14, %s40_s21  }
  0x10   : > { %s1124_s25 = scalar_select %p966_p9, 1, 0 }
  0x11   : > { %p973_p11 = por %p125_p10, %p53_p3  ;;  %s151_s28 = sand.u32 1, %s874_s14  }
  0x12   : > { %s635_s29 = sshll.u32 %s151_s28, 7  ;;  %s655_s30 = sshll.u32 %s882_s16, 11 }
  0x13   : > { %s1125_s27 = scalar_select %p973_p11, 1, 0 }
  0x14   : > { %s984_s6 = scalar_lea.hbm %s1117_s0, %s655_s30  ;;  %s155_s7 = scalar_lea.vmem [#allocation3], %s635_s29 }
  0x15   : > { %s164_s8 = sshll.u32 %s155_s7, 4  ;;  %p990_p0 = pnand %p715_p13, %p956_p4  ;;  %s986_s8 = int_to_ptr.vmem [resolvable:$true] %s164_s8 }
  0x16   : > { %s995_s10 = scalar_lea.sflag [#allocation4], %s151_s28  ;;  %s774_s11 = scalar_lea.hbm %s984_s6, 2048 }
  0x17   : > { %p775_p2 = scmp.ne.s32.totalorder %s984_s6, %s774_s11  ;;  %p776_p3 = pneg %p990_p0 }
  0x18   : > { %s779_s21 = scalar_lea.hbm %s1117_s0, 4096  ;;  %p780_p4 = scmp.lt.u32.totalorder %s984_s6, %s1117_s0 }
  0x19   : > { %p777_p5 = pnand %p776_p3, %p775_p2  ;;  %p781_p7 = scmp.lt.u32.totalorder %s779_s21, %s774_s11 }
  0x1a   : > { %p783_p13 = scmp.lt.u32.totalorder %s774_s11, %s984_s6 }
  0x1b   : > { %p778_p6 = pneg %p777_p5  ;;  %p782_p10 = por %p781_p7, %p780_p4 }
  0x1d   : > { %p784_p12 = por %p783_p13, %p782_p10 }
  0x1f   : > { %p785_p1 = pnand %p784_p12, %p778_p6 }
  0x21   : > { %788 = shalt.err (!%p785_p1)
}
  0x22   : > { %s789_s28 = scalar_lea.vmem %s986_s8, 2048  ;;  %s888_s29 = smov [#allocation3]  }
  0x23   : > { %p790_p2 = scmp.ne.s32.totalorder %s986_s8, %s789_s28  ;;  %s794_s30 = sshll.u32 %s888_s29, 4  ;;  %s795_s30 = int_to_ptr.vmem [resolvable:$false] %s794_s30 }
  0x24   : > { %s796_s4 = scalar_lea.vmem %s795_s30, 4096  ;;  %p797_p9 = scmp.lt.s32.totalorder %s986_s8, %s795_s30 }
  0x25   : > { %p792_p5 = pnand %p790_p2, %p776_p3  ;;  %p798_p4 = scmp.lt.s32.totalorder %s796_s4, %s789_s28 }
  0x27   : > { %p793_p11 = pneg %p792_p5  ;;  %p799_p7 = por %p798_p4, %p797_p9 }
  0x29   : > { %p800_p10 = pnand %p799_p7, %p793_p11 }
  0x2b   : > { %803 = shalt.err (!%p800_p10)
}
  0x2c   : > { %s889_s5 = smov 256   ;;  %s890_s7 = smov 16  }
  0x2d   : > { %710 = dma.hbm_to_vmem [thread:$0]  (!%p990_p0), %s984_s6, 2048, %s986_s8, %s995_s10, %s889_s5, %s889_s5, %s890_s7  }
  0x2e   : > { %p172_p12 = scmp.lt.s32.totalorder %s886_s17, 3  ;;  %p1127_p1 = scmp.ge.s32.totalorder %s886_s17, 1 }
  0x30   : > { %p173_p3 = pnand %p1127_p1, %p172_p12 }
  0x31   : > { %s1027_s11 = sand.u32 (!%p173_p3), 1, %s870_s13  }
  0x32   : > { %176 = sbr.rel (%p173_p3) target bundleno = 687 (0x2af), region = 32  ;;  %s639_s18 = sshll.u32 (!%p173_p3), %s1027_s11, 7 }
  0x33   : > { %s179_s19 = scalar_lea.sflag (!%p173_p3), [#allocation4], %s1027_s11  ;;  %s182_s21 = scalar_lea.vmem (!%p173_p3), [#allocation3], %s639_s18 }
  0x39   : > { %857 = dma.done.wait (%p962_p8), %s179_s19, 2048  }
  0x3a   : > { %859 = vsyncadd (%p962_p8), %s179_s19, 4294965248  ;;  %v217_v0 = vld [vmem:[%s182_s21] sm:$0xff]  ;;  %v640_v1 = vld [vmem:[%s182_s21 + $0x8] sm:$0xff]  ;;  %v891_v27 = vmov 0.0|0.0   ;;  %vm892_vm0 = vmmov 0   ;;  %v893_v37 = vmov 0.0   ;;  %v325_v38 = vlaneseq }
  0x3b   : > { %v219_v2 = vld [vmem:[%s182_s21 + $0x20] sm:$0xff]  ;;  %v242_v3 = vadd.f32 %v640_v1, %v217_v0  ;;  %v642_v4 = vld [vmem:[%s182_s21 + $0x28] sm:$0xff]  ;;  %v218_v5 = vld [vmem:[%s182_s21 + $0x10] sm:$0xff]  ;;  %691 = vmatprep.subr.bf16.mxu0 %v891_v27  ;;  %683 = vmatprep.mubr.msk.f32.mxu0 %vm892_vm0, %v893_v37  ;;  %vm336_vm1 = vcmask 130112   ;;  %vm343_vm2 = vcmask 195712   ;;  %vm350_vm3 = vcmask 261312  }
  0x3c   : > { %v641_v6 = vld [vmem:[%s182_s21 + $0x18] sm:$0xff]  ;;  %v244_v7 = vadd.f32 %v642_v4, %v219_v2  ;;  %v220_v8 = vld [vmem:[%s182_s21 + $0x30] sm:$0xff]  ;;  %v221_v12 = vld [vmem:[%s182_s21 + $0x40] sm:$0xff]  ;;  %686 = vmatprep.subr.mxu1 %v893_v37  ;;  %688 = vmatprep.mubr.msk.f32.mxu1 %vm892_vm0, %v893_v37  ;;  %v326_v39 = vand.u32 127, %v325_v38  ;;  %v328_v40 = vshrl.u32 %v325_v38, 7  ;;  %vm357_vm4 = vcmask 326912  }
  0x3d   : > { %v643_v9 = vld [vmem:[%s182_s21 + $0x38] sm:$0xff]  ;;  %285 = vadd.xlane.f32.xlu0 %v242_v3  ;;  %v243_v10 = vadd.f32 %v641_v6, %v218_v5  ;;  %v644_v13 = vld [vmem:[%s182_s21 + $0x48] sm:$0xff]  ;;  %v222_v14 = vld [vmem:[%s182_s21 + $0x50] sm:$0xff]  ;;  %vm364_vm5 = vcmask 392512   ;;  %vm371_vm6 = vcmask 458112   ;;  %vm378_vm7 = vcmask 523712  }
  0x3e   : > { %289 = vadd.xlane.f32.xlu1 %v244_v7  ;;  %v245_v11 = vadd.f32 %v643_v9, %v220_v8  ;;  %v645_v15 = vld [vmem:[%s182_s21 + $0x58] sm:$0xff]  ;;  %v246_v16 = vadd.f32 %v644_v13, %v221_v12  ;;  %v223_v18 = vld [vmem:[%s182_s21 + $0x60] sm:$0xff]  ;;  %v646_v19 = vld [vmem:[%s182_s21 + $0x68] sm:$0xff]  ;;  %v331_v41 = vadd.s32 4294967288, %v326_v39  ;;  %v338_v43 = vadd.s32 4294967280, %v326_v39  ;;  %s652_s8 = sshll.u32 %s878_s15, 4 }
  0x3f   : > { %v247_v17 = vadd.f32 %v645_v15, %v222_v14  ;;  %v224_v20 = vld [vmem:[%s182_s21 + $0x70] sm:$0xff]  ;;  %v647_v21 = vld [vmem:[%s182_s21 + $0x78] sm:$0xff]  ;;  %v248_v22 = vadd.f32 %v646_v19, %v223_v18  ;;  %v309_v24 = vld [vmem:[%s1118_s1] sm:$0xff]  ;;  %v345_v44 = vadd.s32 4294967272, %v326_v39  ;;  %v329_v46 = vsub.s32 %v326_v39, %v328_v40  ;;  %s203_s9 = scalar_lea.vmem [#allocation6], %s1027_s11  ;;  %s1068_s28 = scalar_lea.hbm %s1120_s3, %s652_s8 }
  0x40   : > { %v249_v23 = vadd.f32 %v647_v21, %v224_v20  ;;  %v310_v25 = vld [vmem:[%s1118_s1 + $0x8] sm:$0xff]  ;;  %v311_v28 = vld [vmem:[%s1118_s1 + $0x10] sm:$0xff]  ;;  %v312_v29 = vld [vmem:[%s1118_s1 + $0x18] sm:$0xff]  ;;  %v334_v48 = vsub.s32 %v331_v41, %v328_v40  ;;  %v352_v49 = vadd.s32 4294967264, %v326_v39  ;;  %v341_v50 = vsub.s32 %v338_v43, %v328_v40  ;;  %s554_s10 = sshll.u32 %s203_s9, 4  ;;  %s542_s29 = scalar_lea.sflag [#allocation5], %s1027_s11  ;;  %s1070_s10 = int_to_ptr.vmem [resolvable:$true] %s554_s10 }
  0x41   : > { %287 = vadd.xlane.f32.xlu0 %v243_v10  ;;  %v692_v26 = vpack.c.bf16 %v310_v25, %v309_v24  ;;  %v695_v30 = vpack.c.bf16 %v312_v29, %v311_v28  ;;  %v313_v31 = vld [vmem:[%s1118_s1 + $0x20] sm:$0xff]  ;;  %v314_v32 = vld [vmem:[%s1118_s1 + $0x28] sm:$0xff]  ;;  %v315_v34 = vld [vmem:[%s1118_s1 + $0x30] sm:$0xff]  ;;  %v348_v53 = vsub.s32 %v345_v44, %v328_v40  ;;  %v359_v54 = vadd.s32 4294967256, %v326_v39  ;;  %s804_s30 = scalar_lea.vmem %s1070_s10, 16  ;;  %p1128_p9 = scmp.ne.s32.totalorder %s1124_s25, 0 }
  0x42   : > { %291 = vadd.xlane.f32.xlu1 %v245_v11  ;;  %v698_v33 = vpack.c.bf16 %v314_v32, %v313_v31  ;;  %v316_v35 = vld [vmem:[%s1118_s1 + $0x38] sm:$0xff]  ;;  %v355_v60 = vsub.s32 %v352_v49, %v328_v40  ;;  %v366_v61 = vadd.s32 4294967248, %v326_v39  ;;  %v373_v2 = vadd.s32 4294967240, %v326_v39  ;;  %p805_p8 = scmp.ne.s32.totalorder %s1070_s10, %s804_s30  ;;  %s894_s15 = smov [#allocation6]  }
  0x43   : > { %693 = vmatpush3.bf16.msra.mxu0 %v692_v26  ;;  %v701_v36 = vpack.c.bf16 %v316_v35, %v315_v34  ;;  %v362_v1 = vsub.s32 %v359_v54, %v328_v40  ;;  %vm380_vm8 = vcmask 523264   ;;  %vm459_vm9 = vcmask 1043456   ;;  %s808_s4 = sshll.u32 %s894_s15, 4  ;;  %s809_s4 = int_to_ptr.vmem [resolvable:$false] %s808_s4 }
  0x44   : > { %694 = vmatprep.subr.bf16.mxu0 %v891_v27  ;;  %v369_v10 = vsub.s32 %v366_v61, %v328_v40  ;;  %v376_v13 = vsub.s32 %v373_v2, %v328_v40  ;;  %vm455_vm10 = vcmask 31744   ;;  %vm539_vm11 = vcmask 516096   ;;  %p806_p11 = pnand %p805_p8, %p1128_p9  ;;  %s810_s5 = scalar_lea.vmem %s809_s4, 32 }
  0x45   : > { %293 = vadd.xlane.f32.xlu0 %v246_v16  ;;  %p811_p6 = scmp.lt.s32.totalorder %s1070_s10, %s809_s4  ;;  %p812_p13 = scmp.lt.s32.totalorder %s810_s5, %s804_s30 }
  0x46   : > { %295 = vadd.xlane.f32.xlu1 %v247_v17  ;;  %p807_p0 = pneg %p806_p11 }
  0x47   : > { %696 = vmatpush3.bf16.msra.mxu0 %v695_v30  ;;  %p813_p2 = por %p812_p13, %p811_p6 }
  0x48   : > { %697 = vmatprep.subr.bf16.mxu0 %v891_v27 }
  0x49   : > { %297 = vadd.xlane.f32.xlu0 %v248_v22  ;;  %p814_p5 = pnand %p813_p2, %p807_p0 }
  0x4a   : > { %299 = vadd.xlane.f32.xlu1 %v249_v23  ;;  %v454_v23 = vld [vmem:[%s1119_s2] sm:$0xf] }
  0x4b   : > { %699 = vmatpush3.bf16.msra.mxu0 %v698_v33  ;;  %687 = vmatpush3.msk.msra.mxu1 %vm459_vm9, %v454_v23 }
  0x4c   : > { %700 = vmatprep.subr.bf16.mxu0 %v891_v27 }
  0x4f   : > { %702 = vmatpush3.bf16.msra.mxu0 %v701_v36 }
  0xca   : > { %v286_v42 = vpop.xlane.xlu0 %285 }
  0xcb   : > { %v290_v45 = vpop.xlane.xlu1 %289  ;;  %v301_v47 = vmul.f32 0.00390625, %v286_v42 }
  0xcc   : > { %v303_v51 = vmul.f32 0.00390625, %v290_v45 }
  0xcd   : > { %v330_v58 = vrot.slane %v301_v47, %v329_v46 }
  0xce   : > { %v288_v52 = vpop.xlane.xlu0 %287  ;;  %v342_v62 = vrot.slane %v303_v51, %v341_v50 }
  0xcf   : > { %v302_v55 = vmul.f32 0.00390625, %v288_v52  ;;  %v292_v56 = vpop.xlane.xlu1 %291 }
  0xd0   : > { %v304_v57 = vmul.f32 0.00390625, %v292_v56 }
  0xd1   : > { %v335_v59 = vrot.slane %v302_v55, %v334_v48 }
  0xd2   : > { %v349_v63 = vrot.slane %v304_v57, %v348_v53  ;;  %v294_v0 = vpop.xlane.xlu0 %293 }
  0xd3   : > { %v337_v3 = vsel %vm336_vm1, %v335_v59, %v330_v58  ;;  %v305_v4 = vmul.f32 0.00390625, %v294_v0  ;;  %v296_v5 = vpop.xlane.xlu1 %295 }
  0xd4   : > { %v344_v6 = vsel %vm343_vm2, %v342_v62, %v337_v3  ;;  %v306_v7 = vmul.f32 0.00390625, %v296_v5 }
  0xd5   : > { %v351_v8 = vsel %vm350_vm3, %v349_v63, %v344_v6  ;;  %v356_v9 = vrot.slane %v305_v4, %v355_v60 }
  0xd6   : > { %v363_v11 = vrot.slane %v306_v7, %v362_v1  ;;  %v298_v12 = vpop.xlane.xlu0 %297 }
  0xd7   : > { %v358_v14 = vsel %vm357_vm4, %v356_v9, %v351_v8  ;;  %v307_v15 = vmul.f32 0.00390625, %v298_v12  ;;  %v300_v16 = vpop.xlane.xlu1 %299 }
  0xd8   : > { %v308_v17 = vmul.f32 0.00390625, %v300_v16  ;;  %v365_v19 = vsel %vm364_vm5, %v363_v11, %v358_v14 }
  0xd9   : > { %v370_v18 = vrot.slane %v307_v15, %v369_v10 }
  0xda   : > { %v377_v20 = vrot.slane %v308_v17, %v376_v13 }
  0xdb   : > { %v372_v21 = vsel %vm371_vm6, %v370_v18, %v365_v19 }
  0xdc   : > { %v379_v22 = vsel %vm378_vm7, %v377_v20, %v372_v21 }
  0xdd   : > { %684 = vmatmul.mubr.msk.f32.vlgmr.msra.gmra.mrb[0].mxu0 %vm380_vm8, %v379_v22 }
 0x1b0   : > { %v449_v24 = vpop.f32.mrb[0].mxu0 }
 0x1b1   : > { %v453_v25 = vmax.f32 %v449_v24, 0.0  ;;  %v685_v26 = vpop.f32.mrb[1].mxu0 }
 0x1b3   : > { %689 = vmatmul.mubr.msk.f32.vlgmr.msra.gmra.mrb[0].mxu1 %vm455_vm10, %v453_v25 }
 0x286   : > { %v529_v27 = vpop.f32.mrb[0].mxu1 }
 0x287   : > { %v651_v28 = vmul.f32 -1.442695, %v529_v27  ;;  %v690_v29 = vpop.f32.mrb[1].mxu1 }
 0x289   : > { %770 = vpow2.f32 %v651_v28 }
 0x293   : > { %v771_v30 = vpop.eup %770 }
 0x294   : > { %v536_v31 = vadd.f32 1.0, %v771_v30 }
 0x296   : > { %772 = vrcp.f32 %v536_v31 }
 0x2a0   : > { %v773_v32 = vpop.eup %772 }
 0x2a1   : > { %540 = vst.msk [vmem:[%s203_s9] sm:$0x1] %vm539_vm11, %v773_v32 }
 0x2a2   : > { %817 = shalt.err (!%p814_p5)
}
 0x2a3   : > { %s818_s11 = scalar_lea.hbm %s1068_s28, 16  ;;  %s822_s19 = scalar_lea.hbm %s1120_s3, 32 }
 0x2a4   : > { %p819_p4 = scmp.ne.s32.totalorder %s1068_s28, %s818_s11  ;;  %p823_p12 = scmp.lt.u32.totalorder %s1068_s28, %s1120_s3 }
 0x2a5   : > { %p824_p1 = scmp.lt.u32.totalorder %s822_s19, %s818_s11  ;;  %p826_p8 = scmp.lt.u32.totalorder %s818_s11, %s1068_s28 }
 0x2a6   : > { %p820_p7 = pnand %p819_p4, %p1128_p9 }
 0x2a7   : > { %p825_p3 = por %p824_p1, %p823_p12 }
 0x2a8   : > { %p821_p10 = pneg %p820_p7 }
 0x2a9   : > { %p827_p11 = por %p826_p8, %p825_p3 }
 0x2ab   : > { %p828_p0 = pnand %p827_p11, %p821_p10 }
 0x2ad   : > { %831 = shalt.err (!%p828_p0)
}
 0x2ae   : > { %705 = dma.vmem_to_hbm [thread:$0]  (%p1128_p9), %s1070_s10, 16, %s1068_s28, %s542_s29  }
 0x2af PF: > { %s566_s6 = sand.u32 1, %s866_s12   ;;  %p1129_p6 = scmp.ne.s32.totalorder %s1125_s27, 0 }
 0x2b0   : > { %p1130_p13 = scmp.ge.s32.totalorder %s886_s17, 2  ;;  %s567_s8 = scalar_lea.sflag [#allocation5], %s566_s6 }
 0x2b2   : > { %p712_p2 = pnand %p1130_p13, %p1129_p6 }
 0x2b4   : > { %861 = dma.done.wait (!%p712_p2), %s567_s8, 16  }
 0x2b5   : > { %863 = vsyncadd (!%p712_p2), %s567_s8, 4294967280  ;;  %s19_s17 = sadd.s32 1, %s886_s17   ;;  %s1131_s12 = smov %s870_s13 }
 0x2b6   : > { %p16_p5 = scmp.ge.s32.totalorder %s19_s17, 4   ;;  %s1132_s13 = smov %s874_s14 }
 0x2b7   : > { %s1133_s14 = smov %s971_s26  ;;  %s1134_s15 = smov %s882_s16 }
 0x2b8   : > { %s1135_s16 = smov %s1137_s20  ;;  %18 = sbr.rel (!%p16_p5) target bundleno = 6 (0x6), region = 86 }
 0x2bf   :  { %571 = vsyncpa [#allocation4], 1 }
 0x2c0   :  { %573 = vsyncpa [#allocation4 + $0x1], 1 }
 0x2c1   :  { %574 = vsyncpa [#allocation5], 1 }
 0x2c2   :  { %576 = vsyncpa [#allocation5 + $0x1], 1 }

</bundles_post_ra>
